<compile_context>
chip_gen: v6e
topology: v6e:2x2x1
jax: 0.10.0
libtpu: 0.0.40
codegen_flags: <defaults>
</compile_context>

<pallas_src>
import functools

import jax
import jax.numpy as jnp
import numpy as np
from jax.experimental import pallas as pl
from jax.experimental.pallas import tpu as pltpu


def _lstm_chunk_kernel(x_ref, wih_ref, whh_ref, bias_ref, wlin_ref, blin_ref,
                       preds_ref, hbuf_ref, h_ref, c_ref, *, tc, batch):
    """One time-chunk of the LSTM recurrence + fused lane-dense Linear head.

    x_ref:     (Tc*B, I)    raw input chunk (auto-DMA'd per grid step)
    wih_ref:   (I, 4H)      W_ih^T with 0.5 pre-folded into i/f/o columns
    whh_ref:   (H, 4H)      W_hh^T with 0.5 pre-folded into i/f/o columns
    bias_ref:  (1, 4H)      (b_ih + b_hh), same pre-scale
    wlin_ref:  (H, Opad)    W_lin^T zero-padded to 128 lanes
    blin_ref:  (1, Opad)    b_lin zero-padded
    preds_ref: (Tc*B, Opad) output chunk (lane-dense, unmasked stores)
    hbuf_ref:  (Tc*B, H)    VMEM scratch: h_t history of this chunk
    h_ref/c_ref: (B, H)     VMEM scratch carried across grid steps
    """
    H = whh_ref.shape[0]
    H4 = whh_ref.shape[1]

    @pl.when(pl.program_id(0) == 0)
    def _init():
        h_ref[...] = jnp.zeros_like(h_ref)
        c_ref[...] = jnp.zeros_like(c_ref)

    # Fused input projection for this chunk (bias + activation pre-scale are
    # already folded into the operands).  For I == 1 this is a broadcast
    # outer product (pure VPU); otherwise a single small MXU matmul.
    if x_ref.shape[1] == 1:
        xp = x_ref[...] * wih_ref[...]                       # (Tc*B, 4H)
    else:
        xp = jnp.dot(x_ref[...], wih_ref[...],
                     preferred_element_type=jnp.float32)
    xp = xp + bias_ref[...]

    # Hoisted once per chunk: resident recurrent weight and g-gate lane mask.
    whh = whh_ref[...]                                       # (H, 4H)
    lane = jax.lax.broadcasted_iota(jnp.int32, (batch, H4), 1)
    g_mask = jnp.logical_and(lane >= 2 * H, lane < 3 * H)

    h = h_ref[...]
    c = c_ref[...]

    # Short static unroll over the chunk; every slice index is static and
    # (8,128)-aligned (batch is a multiple of 8).
    for t in range(tc):
        r0 = t * batch
        gates = xp[r0:r0 + batch, :] + jnp.dot(
            h, whh, preferred_element_type=jnp.float32)      # (B, 4H)

        # Single EUP pass: tanh over the whole gates vreg.  Because the i/f/o
        # columns were pre-scaled by 0.5, 0.5*(tanh+1) == sigmoid of the
        # unscaled pre-activation; the g columns keep plain tanh.
        a = jnp.tanh(gates)
        a = jnp.where(g_mask, a, 0.5 * (a + 1.0))

        i = a[:, 0 * H:1 * H]
        f = a[:, 1 * H:2 * H]
        g = a[:, 2 * H:3 * H]
        o = a[:, 3 * H:4 * H]

        c = f * c + i * g
        h = o * jnp.tanh(c)
        hbuf_ref[r0:r0 + batch, :] = h

    # Persist carried state for the next time chunk.
    h_ref[...] = h
    c_ref[...] = c

    # Fused Linear head for the whole chunk: one matmul, one unmasked
    # lane-dense store.
    preds_ref[...] = (jnp.dot(hbuf_ref[...], wlin_ref[...],
                              preferred_element_type=jnp.float32)
                      + blin_ref[...]).astype(preds_ref.dtype)


def predictor_forward(x, w_ih, w_hh, b_ih, b_hh, w_lin, b_lin, *,
                      time_chunk=8):
    """Pallas equivalent of Predictor.forward.

    x:      (T, B, I) float32
    w_ih:   (4H, I)   w_hh: (4H, H)   b_ih/b_hh: (4H,)   (PyTorch LSTM shapes)
    w_lin:  (O, H)    b_lin: (O,)
    returns (T, B, O) float32
    """
    T, B, I = x.shape
    H4 = w_ih.shape[0]
    H = H4 // 4
    O = w_lin.shape[0]

    # Pad batch to the f32 sublane tile (8) and time to a chunk multiple so
    # every in-kernel slice/store is tile-aligned.  Padded rows/steps are
    # independent/causal and are sliced away at the end.
    B_pad = -(-B // 8) * 8
    Tc = min(time_chunk, T)
    T_pad = -(-T // Tc) * Tc
    O_pad = max(128, -(-O // 128) * 128)          # lane-dense head output

    xf = x.astype(jnp.float32)
    if (T_pad, B_pad) != (T, B):
        xf = jnp.pad(xf, ((0, T_pad - T), (0, B_pad - B), (0, 0)))
    x_flat = xf.reshape(T_pad * B_pad, I)

    # Pre-fold 0.5 into the i/f/o gate columns (sigmoid(z)=0.5*(tanh(0.5z)+1))
    # so the kernel needs a single tanh pass per step; g columns unscaled.
    cols = jnp.arange(H4)
    col_scale = jnp.where((cols >= 2 * H) & (cols < 3 * H),
                          1.0, 0.5).astype(jnp.float32)
    wih_t = w_ih.T.astype(jnp.float32) * col_scale[None, :]          # (I, 4H)
    whh_t = w_hh.T.astype(jnp.float32) * col_scale[None, :]          # (H, 4H)
    bias = ((b_ih + b_hh).astype(jnp.float32) * col_scale).reshape(1, H4)

    # Lane-dense Linear head operands (zero-padded to O_pad lanes).
    wlin_t = jnp.zeros((H, O_pad), jnp.float32).at[:, :O].set(
        w_lin.T.astype(jnp.float32))
    blin = jnp.zeros((1, O_pad), jnp.float32).at[:, :O].set(
        b_lin.astype(jnp.float32).reshape(1, O))

    rows_per_chunk = Tc * B_pad
    n_chunks = T_pad // Tc

    kernel = functools.partial(_lstm_chunk_kernel, tc=Tc, batch=B_pad)

    # Explicit VMEM budget: double-buffered x/preds chunks + resident weights
    # + scratch (+ xp temp), with 2x slack; clamped to fit every generation
    # (v7x has only 64 MiB physical VMEM).
    vmem_bytes = 4 * (2 * rows_per_chunk * (I + O_pad)
                      + I * H4 + H * H4 + H4 + H * O_pad + O_pad
                      + rows_per_chunk * H + 2 * B_pad * H
                      + 2 * rows_per_chunk * H4)
    vmem_limit = int(min(max(2 * vmem_bytes, 16 << 20), 48 << 20))

    resident = lambda t: (0, 0)
    preds_flat = pl.pallas_call(
        kernel,
        out_shape=jax.ShapeDtypeStruct((T_pad * B_pad, O_pad), jnp.float32),
        grid=(n_chunks,),
        in_specs=[
            pl.BlockSpec((rows_per_chunk, I), lambda t: (t, 0)),   # x chunk
            pl.BlockSpec((I, H4), resident),                       # W_ih^T
            pl.BlockSpec((H, H4), resident),                       # W_hh^T
            pl.BlockSpec((1, H4), resident),                       # bias
            pl.BlockSpec((H, O_pad), resident),                    # W_lin^T
            pl.BlockSpec((1, O_pad), resident),                    # b_lin
        ],
        out_specs=pl.BlockSpec((rows_per_chunk, O_pad), lambda t: (t, 0)),
        scratch_shapes=[
            pltpu.VMEM((rows_per_chunk, H), jnp.float32),  # h history (chunk)
            pltpu.VMEM((B_pad, H), jnp.float32),           # carried h
            pltpu.VMEM((B_pad, H), jnp.float32),           # carried c
        ],
        compiler_params=pltpu.CompilerParams(
            dimension_semantics=("arbitrary",),
            vmem_limit_bytes=vmem_limit),
    )(x_flat, wih_t, whh_t, bias, wlin_t, blin)

    # TODO(synk): optional v7x-only batch-parallel grid axis (2 TensorCores)
    # and bf16 MXU operands were left out to keep f32-exact semantics.
    preds = preds_flat.reshape(T_pad, B_pad, O_pad)[:T, :B, :O]
    return preds


def predictor_forward_ref(x, w_ih, w_hh, b_ih, b_hh, w_lin, b_lin):
    """Pure-JAX reference (mirrors torch.nn.LSTM + nn.Linear semantics)."""
    T, B, I = x.shape
    H = w_hh.shape[1]

    def step(carry, x_t):
        h, c = carry
        gates = x_t @ w_ih.T + h @ w_hh.T + b_ih + b_hh
        i = jax.nn.sigmoid(gates[:, :H])
        f = jax.nn.sigmoid(gates[:, H:2 * H])
        g = jnp.tanh(gates[:, 2 * H:3 * H])
        o = jax.nn.sigmoid(gates[:, 3 * H:])
        c = f * c + i * g
        h = o * jnp.tanh(c)
        return (h, c), h

    init = (jnp.zeros((B, H), jnp.float32), jnp.zeros((B, H), jnp.float32))
    _, hs = jax.lax.scan(step, init, x)
    return hs @ w_lin.T + b_lin


if __name__ == "__main__":
    # Small shapes consistent with the module: univariate series (input_dim=1),
    # hid_dim=32 (4H = 128 lanes), output_dim=2, seq_len=8, batch=8 (fills the
    # f32 sublane tile).
    T, B, I, H, O = 8, 8, 1, 32, 2

    key = jax.random.PRNGKey(0)
    ks = jax.random.split(key, 7)
    s = 1.0 / np.sqrt(H)  # PyTorch LSTM/Linear default init range
    w_ih = jax.random.uniform(ks[0], (4 * H, I), jnp.float32, -s, s)
    w_hh = jax.random.uniform(ks[1], (4 * H, H), jnp.float32, -s, s)
    b_ih = jax.random.uniform(ks[2], (4 * H,), jnp.float32, -s, s)
    b_hh = jax.random.uniform(ks[3], (4 * H,), jnp.float32, -s, s)
    w_lin = jax.random.uniform(ks[4], (O, H), jnp.float32, -s, s)
    b_lin = jax.random.uniform(ks[5], (O,), jnp.float32, -s, s)
    x = jax.random.normal(ks[6], (T, B, I), jnp.float32)

    preds = predictor_forward(x, w_ih, w_hh, b_ih, b_hh, w_lin, b_lin)
    preds = jax.block_until_ready(preds)

    ref = predictor_forward_ref(x, w_ih, w_hh, b_ih, b_hh, w_lin, b_lin)
    np.testing.assert_allclose(np.asarray(preds), np.asarray(ref),
                               rtol=1e-5, atol=1e-5)
    print("KERNEL_OK")
</pallas_src>

<mosaic_0001>
module attributes {stable_mosaic.version = 11 : i64} {
  func.func @_lstm_chunk_kernel(%arg0: i32, %arg1: memref<64x1xf32, #tpu.memory_space<vmem>>, %arg2: memref<1x128xf32, #tpu.memory_space<vmem>>, %arg3: memref<32x128xf32, #tpu.memory_space<vmem>>, %arg4: memref<1x128xf32, #tpu.memory_space<vmem>>, %arg5: memref<32x128xf32, #tpu.memory_space<vmem>>, %arg6: memref<1x128xf32, #tpu.memory_space<vmem>>, %arg7: memref<64x128xf32, #tpu.memory_space<vmem>>, %arg8: memref<64x32xf32, #tpu.memory_space<vmem>>, %arg9: memref<8x32xf32, #tpu.memory_space<vmem>>, %arg10: memref<8x32xf32, #tpu.memory_space<vmem>>) attributes {dimension_semantics = [#tpu.dimension_semantics<arbitrary>], iteration_bounds = array<i64: 1>, scalar_prefetch = 0 : i64, scratch_operands = 3 : i64, tpu.core_type = #tpu.core_type<tc>, window_params = [{transform_indices = @transform_0, window_bounds = array<i64: 64, 1>}, {pipeline_mode = #tpu.pipeline_mode<synchronous>, transform_indices = @transform_1, window_bounds = array<i64: 1, 128>}, {pipeline_mode = #tpu.pipeline_mode<synchronous>, transform_indices = @transform_2, window_bounds = array<i64: 32, 128>}, {pipeline_mode = #tpu.pipeline_mode<synchronous>, transform_indices = @transform_3, window_bounds = array<i64: 1, 128>}, {pipeline_mode = #tpu.pipeline_mode<synchronous>, transform_indices = @transform_4, window_bounds = array<i64: 32, 128>}, {pipeline_mode = #tpu.pipeline_mode<synchronous>, transform_indices = @transform_5, window_bounds = array<i64: 1, 128>}, {transform_indices = @transform_6, window_bounds = array<i64: 64, 128>}]} {
    %c0_i32 = arith.constant 0 : i32
    %0 = arith.cmpi eq, %arg0, %c0_i32 : i32
    %1 = arith.extui %0 : i1 to i32
    %c0_i32_0 = arith.constant 0 : i32
    %2 = arith.cmpi ne, %1, %c0_i32_0 : i32
    scf.if %2 {
      %cst_57 = arith.constant 0.000000e+00 : f32
      %181 = vector.broadcast %cst_57 : f32 to vector<8x32xf32>
      %c0_58 = arith.constant 0 : index
      %c0_59 = arith.constant 0 : index
      %182 = vector.load %arg9[%c0_58, %c0_59] : memref<8x32xf32, #tpu.memory_space<vmem>>, vector<8x32xf32>
      tpu.vector_store %arg9[%c0_58, %c0_59], %181 {strides = array<i32>} : memref<8x32xf32, #tpu.memory_space<vmem>>, vector<8x32xf32>,
      %cst_60 = arith.constant 0.000000e+00 : f32
      %183 = vector.broadcast %cst_60 : f32 to vector<8x32xf32>
      %c0_61 = arith.constant 0 : index
      %c0_62 = arith.constant 0 : index
      %184 = vector.load %arg10[%c0_61, %c0_62] : memref<8x32xf32, #tpu.memory_space<vmem>>, vector<8x32xf32>
      tpu.vector_store %arg10[%c0_61, %c0_62], %183 {strides = array<i32>} : memref<8x32xf32, #tpu.memory_space<vmem>>, vector<8x32xf32>,
    } else {
    }
    %c0 = arith.constant 0 : index
    %c0_1 = arith.constant 0 : index
    %3 = vector.load %arg1[%c0, %c0_1] : memref<64x1xf32, #tpu.memory_space<vmem>>, vector<64x1xf32>
    %c0_2 = arith.constant 0 : index
    %c0_3 = arith.constant 0 : index
    %4 = vector.load %arg2[%c0_2, %c0_3] : memref<1x128xf32, #tpu.memory_space<vmem>>, vector<1x128xf32>
    %5 = vector.broadcast %3 : vector<64x1xf32> to vector<64x128xf32>
    %6 = vector.broadcast %4 : vector<1x128xf32> to vector<64x128xf32>
    %7 = arith.mulf %5, %6 : vector<64x128xf32>
    %c0_4 = arith.constant 0 : index
    %c0_5 = arith.constant 0 : index
    %8 = vector.load %arg4[%c0_4, %c0_5] : memref<1x128xf32, #tpu.memory_space<vmem>>, vector<1x128xf32>
    %9 = vector.broadcast %8 : vector<1x128xf32> to vector<64x128xf32>
    %10 = arith.addf %7, %9 : vector<64x128xf32>
    %c0_6 = arith.constant 0 : index
    %c0_7 = arith.constant 0 : index
    %11 = vector.load %arg3[%c0_6, %c0_7] : memref<32x128xf32, #tpu.memory_space<vmem>>, vector<32x128xf32>
    %12 = tpu.iota {dimensions = array<i32: 1>} : vector<8x128xi32>
    %c64_i32 = arith.constant 64 : i32
    %13 = vector.broadcast %c64_i32 : i32 to vector<8x128xi32>
    %14 = arith.cmpi sge, %12, %13 : vector<8x128xi32>
    %c96_i32 = arith.constant 96 : i32
    %15 = vector.broadcast %c96_i32 : i32 to vector<8x128xi32>
    %16 = arith.cmpi slt, %12, %15 : vector<8x128xi32>
    %17 = arith.andi %14, %16 : vector<8x128xi1>
    %c0_8 = arith.constant 0 : index
    %c0_9 = arith.constant 0 : index
    %18 = vector.load %arg9[%c0_8, %c0_9] : memref<8x32xf32, #tpu.memory_space<vmem>>, vector<8x32xf32>
    %c0_10 = arith.constant 0 : index
    %c0_11 = arith.constant 0 : index
    %19 = vector.load %arg10[%c0_10, %c0_11] : memref<8x32xf32, #tpu.memory_space<vmem>>, vector<8x32xf32>
    %20 = vector.extract_strided_slice %10 {offsets = [0, 0], sizes = [8, 128], strides = [1, 1]} : vector<64x128xf32> to vector<8x128xf32>
    %cst = arith.constant dense<0.000000e+00> : vector<8x128xf32>
    %21 = tpu.matmul %18, %11, %cst {dimension_numbers = #tpu.dot_dimension_numbers<[1], [0], [0], [1], [0, 0, 1, 1], [], []>} : vector<8x32xf32>, vector<32x128xf32>, vector<8x128xf32> -> vector<8x128xf32>
    %22 = arith.addf %20, %21 : vector<8x128xf32>
    %23 = math.tanh %22 : vector<8x128xf32>
    %cst_12 = arith.constant 1.000000e+00 : f32
    %24 = vector.broadcast %cst_12 : f32 to vector<8x128xf32>
    %25 = arith.addf %23, %24 : vector<8x128xf32>
    %cst_13 = arith.constant 5.000000e-01 : f32
    %26 = vector.broadcast %cst_13 : f32 to vector<8x128xf32>
    %27 = arith.mulf %26, %25 : vector<8x128xf32>
    %28 = arith.select %17, %23, %27 : vector<8x128xi1>, vector<8x128xf32>
    %29 = vector.extract_strided_slice %28 {offsets = [0, 0], sizes = [8, 32], strides = [1, 1]} : vector<8x128xf32> to vector<8x32xf32>
    %30 = vector.extract_strided_slice %28 {offsets = [0, 32], sizes = [8, 32], strides = [1, 1]} : vector<8x128xf32> to vector<8x32xf32>
    %31 = vector.extract_strided_slice %28 {offsets = [0, 64], sizes = [8, 32], strides = [1, 1]} : vector<8x128xf32> to vector<8x32xf32>
    %32 = vector.extract_strided_slice %28 {offsets = [0, 96], sizes = [8, 32], strides = [1, 1]} : vector<8x128xf32> to vector<8x32xf32>
    %33 = arith.mulf %30, %19 : vector<8x32xf32>
    %34 = arith.mulf %29, %31 : vector<8x32xf32>
    %35 = arith.addf %33, %34 : vector<8x32xf32>
    %36 = math.tanh %35 : vector<8x32xf32>
    %37 = arith.mulf %32, %36 : vector<8x32xf32>
    %c0_14 = arith.constant 0 : index
    %c0_15 = arith.constant 0 : index
    %38 = vector.load %arg8[%c0_14, %c0_15] : memref<64x32xf32, #tpu.memory_space<vmem>>, vector<8x32xf32>
    tpu.vector_store %arg8[%c0_14, %c0_15], %37 {strides = array<i32>} : memref<64x32xf32, #tpu.memory_space<vmem>>, vector<8x32xf32>,
    %39 = vector.extract_strided_slice %10 {offsets = [8, 0], sizes = [8, 128], strides = [1, 1]} : vector<64x128xf32> to vector<8x128xf32>
    %cst_16 = arith.constant dense<0.000000e+00> : vector<8x128xf32>
    %40 = tpu.matmul %37, %11, %cst_16 {dimension_numbers = #tpu.dot_dimension_numbers<[1], [0], [0], [1], [0, 0, 1, 1], [], []>} : vector<8x32xf32>, vector<32x128xf32>, vector<8x128xf32> -> vector<8x128xf32>
    %41 = arith.addf %39, %40 : vector<8x128xf32>
    %42 = math.tanh %41 : vector<8x128xf32>
    %cst_17 = arith.constant 1.000000e+00 : f32
    %43 = vector.broadcast %cst_17 : f32 to vector<8x128xf32>
    %44 = arith.addf %42, %43 : vector<8x128xf32>
    %cst_18 = arith.constant 5.000000e-01 : f32
    %45 = vector.broadcast %cst_18 : f32 to vector<8x128xf32>
    %46 = arith.mulf %45, %44 : vector<8x128xf32>
    %47 = arith.select %17, %42, %46 : vector<8x128xi1>, vector<8x128xf32>
    %48 = vector.extract_strided_slice %47 {offsets = [0, 0], sizes = [8, 32], strides = [1, 1]} : vector<8x128xf32> to vector<8x32xf32>
    %49 = vector.extract_strided_slice %47 {offsets = [0, 32], sizes = [8, 32], strides = [1, 1]} : vector<8x128xf32> to vector<8x32xf32>
    %50 = vector.extract_strided_slice %47 {offsets = [0, 64], sizes = [8, 32], strides = [1, 1]} : vector<8x128xf32> to vector<8x32xf32>
    %51 = vector.extract_strided_slice %47 {offsets = [0, 96], sizes = [8, 32], strides = [1, 1]} : vector<8x128xf32> to vector<8x32xf32>
    %52 = arith.mulf %49, %35 : vector<8x32xf32>
    %53 = arith.mulf %48, %50 : vector<8x32xf32>
    %54 = arith.addf %52, %53 : vector<8x32xf32>
    %55 = math.tanh %54 : vector<8x32xf32>
    %56 = arith.mulf %51, %55 : vector<8x32xf32>
    %c8 = arith.constant 8 : index
    %c0_19 = arith.constant 0 : index
    %57 = vector.load %arg8[%c8, %c0_19] : memref<64x32xf32, #tpu.memory_space<vmem>>, vector<8x32xf32>
    tpu.vector_store %arg8[%c8, %c0_19], %56 {strides = array<i32>} : memref<64x32xf32, #tpu.memory_space<vmem>>, vector<8x32xf32>,
    %58 = vector.extract_strided_slice %10 {offsets = [16, 0], sizes = [8, 128], strides = [1, 1]} : vector<64x128xf32> to vector<8x128xf32>
    %cst_20 = arith.constant dense<0.000000e+00> : vector<8x128xf32>
    %59 = tpu.matmul %56, %11, %cst_20 {dimension_numbers = #tpu.dot_dimension_numbers<[1], [0], [0], [1], [0, 0, 1, 1], [], []>} : vector<8x32xf32>, vector<32x128xf32>, vector<8x128xf32> -> vector<8x128xf32>
    %60 = arith.addf %58, %59 : vector<8x128xf32>
    %61 = math.tanh %60 : vector<8x128xf32>
    %cst_21 = arith.constant 1.000000e+00 : f32
    %62 = vector.broadcast %cst_21 : f32 to vector<8x128xf32>
    %63 = arith.addf %61, %62 : vector<8x128xf32>
    %cst_22 = arith.constant 5.000000e-01 : f32
    %64 = vector.broadcast %cst_22 : f32 to vector<8x128xf32>
    %65 = arith.mulf %64, %63 : vector<8x128xf32>
    %66 = arith.select %17, %61, %65 : vector<8x128xi1>, vector<8x128xf32>
    %67 = vector.extract_strided_slice %66 {offsets = [0, 0], sizes = [8, 32], strides = [1, 1]} : vector<8x128xf32> to vector<8x32xf32>
    %68 = vector.extract_strided_slice %66 {offsets = [0, 32], sizes = [8, 32], strides = [1, 1]} : vector<8x128xf32> to vector<8x32xf32>
    %69 = vector.extract_strided_slice %66 {offsets = [0, 64], sizes = [8, 32], strides = [1, 1]} : vector<8x128xf32> to vector<8x32xf32>
    %70 = vector.extract_strided_slice %66 {offsets = [0, 96], sizes = [8, 32], strides = [1, 1]} : vector<8x128xf32> to vector<8x32xf32>
    %71 = arith.mulf %68, %54 : vector<8x32xf32>
    %72 = arith.mulf %67, %69 : vector<8x32xf32>
    %73 = arith.addf %71, %72 : vector<8x32xf32>
    %74 = math.tanh %73 : vector<8x32xf32>
    %75 = arith.mulf %70, %74 : vector<8x32xf32>
    %c16 = arith.constant 16 : index
    %c0_23 = arith.constant 0 : index
    %76 = vector.load %arg8[%c16, %c0_23] : memref<64x32xf32, #tpu.memory_space<vmem>>, vector<8x32xf32>
    tpu.vector_store %arg8[%c16, %c0_23], %75 {strides = array<i32>} : memref<64x32xf32, #tpu.memory_space<vmem>>, vector<8x32xf32>,
    %77 = vector.extract_strided_slice %10 {offsets = [24, 0], sizes = [8, 128], strides = [1, 1]} : vector<64x128xf32> to vector<8x128xf32>
    %cst_24 = arith.constant dense<0.000000e+00> : vector<8x128xf32>
    %78 = tpu.matmul %75, %11, %cst_24 {dimension_numbers = #tpu.dot_dimension_numbers<[1], [0], [0], [1], [0, 0, 1, 1], [], []>} : vector<8x32xf32>, vector<32x128xf32>, vector<8x128xf32> -> vector<8x128xf32>
    %79 = arith.addf %77, %78 : vector<8x128xf32>
    %80 = math.tanh %79 : vector<8x128xf32>
    %cst_25 = arith.constant 1.000000e+00 : f32
    %81 = vector.broadcast %cst_25 : f32 to vector<8x128xf32>
    %82 = arith.addf %80, %81 : vector<8x128xf32>
    %cst_26 = arith.constant 5.000000e-01 : f32
    %83 = vector.broadcast %cst_26 : f32 to vector<8x128xf32>
    %84 = arith.mulf %83, %82 : vector<8x128xf32>
    %85 = arith.select %17, %80, %84 : vector<8x128xi1>, vector<8x128xf32>
    %86 = vector.extract_strided_slice %85 {offsets = [0, 0], sizes = [8, 32], strides = [1, 1]} : vector<8x128xf32> to vector<8x32xf32>
    %87 = vector.extract_strided_slice %85 {offsets = [0, 32], sizes = [8, 32], strides = [1, 1]} : vector<8x128xf32> to vector<8x32xf32>
    %88 = vector.extract_strided_slice %85 {offsets = [0, 64], sizes = [8, 32], strides = [1, 1]} : vector<8x128xf32> to vector<8x32xf32>
    %89 = vector.extract_strided_slice %85 {offsets = [0, 96], sizes = [8, 32], strides = [1, 1]} : vector<8x128xf32> to vector<8x32xf32>
    %90 = arith.mulf %87, %73 : vector<8x32xf32>
    %91 = arith.mulf %86, %88 : vector<8x32xf32>
    %92 = arith.addf %90, %91 : vector<8x32xf32>
    %93 = math.tanh %92 : vector<8x32xf32>
    %94 = arith.mulf %89, %93 : vector<8x32xf32>
    %c24 = arith.constant 24 : index
    %c0_27 = arith.constant 0 : index
    %95 = vector.load %arg8[%c24, %c0_27] : memref<64x32xf32, #tpu.memory_space<vmem>>, vector<8x32xf32>
    tpu.vector_store %arg8[%c24, %c0_27], %94 {strides = array<i32>} : memref<64x32xf32, #tpu.memory_space<vmem>>, vector<8x32xf32>,
    %96 = vector.extract_strided_slice %10 {offsets = [32, 0], sizes = [8, 128], strides = [1, 1]} : vector<64x128xf32> to vector<8x128xf32>
    %cst_28 = arith.constant dense<0.000000e+00> : vector<8x128xf32>
    %97 = tpu.matmul %94, %11, %cst_28 {dimension_numbers = #tpu.dot_dimension_numbers<[1], [0], [0], [1], [0, 0, 1, 1], [], []>} : vector<8x32xf32>, vector<32x128xf32>, vector<8x128xf32> -> vector<8x128xf32>
    %98 = arith.addf %96, %97 : vector<8x128xf32>
    %99 = math.tanh %98 : vector<8x128xf32>
    %cst_29 = arith.constant 1.000000e+00 : f32
    %100 = vector.broadcast %cst_29 : f32 to vector<8x128xf32>
    %101 = arith.addf %99, %100 : vector<8x128xf32>
    %cst_30 = arith.constant 5.000000e-01 : f32
    %102 = vector.broadcast %cst_30 : f32 to vector<8x128xf32>
    %103 = arith.mulf %102, %101 : vector<8x128xf32>
    %104 = arith.select %17, %99, %103 : vector<8x128xi1>, vector<8x128xf32>
    %105 = vector.extract_strided_slice %104 {offsets = [0, 0], sizes = [8, 32], strides = [1, 1]} : vector<8x128xf32> to vector<8x32xf32>
    %106 = vector.extract_strided_slice %104 {offsets = [0, 32], sizes = [8, 32], strides = [1, 1]} : vector<8x128xf32> to vector<8x32xf32>
    %107 = vector.extract_strided_slice %104 {offsets = [0, 64], sizes = [8, 32], strides = [1, 1]} : vector<8x128xf32> to vector<8x32xf32>
    %108 = vector.extract_strided_slice %104 {offsets = [0, 96], sizes = [8, 32], strides = [1, 1]} : vector<8x128xf32> to vector<8x32xf32>
    %109 = arith.mulf %106, %92 : vector<8x32xf32>
    %110 = arith.mulf %105, %107 : vector<8x32xf32>
    %111 = arith.addf %109, %110 : vector<8x32xf32>
    %112 = math.tanh %111 : vector<8x32xf32>
    %113 = arith.mulf %108, %112 : vector<8x32xf32>
    %c32 = arith.constant 32 : index
    %c0_31 = arith.constant 0 : index
    %114 = vector.load %arg8[%c32, %c0_31] : memref<64x32xf32, #tpu.memory_space<vmem>>, vector<8x32xf32>
    tpu.vector_store %arg8[%c32, %c0_31], %113 {strides = array<i32>} : memref<64x32xf32, #tpu.memory_space<vmem>>, vector<8x32xf32>,
    %115 = vector.extract_strided_slice %10 {offsets = [40, 0], sizes = [8, 128], strides = [1, 1]} : vector<64x128xf32> to vector<8x128xf32>
    %cst_32 = arith.constant dense<0.000000e+00> : vector<8x128xf32>
    %116 = tpu.matmul %113, %11, %cst_32 {dimension_numbers = #tpu.dot_dimension_numbers<[1], [0], [0], [1], [0, 0, 1, 1], [], []>} : vector<8x32xf32>, vector<32x128xf32>, vector<8x128xf32> -> vector<8x128xf32>
    %117 = arith.addf %115, %116 : vector<8x128xf32>
    %118 = math.tanh %117 : vector<8x128xf32>
    %cst_33 = arith.constant 1.000000e+00 : f32
    %119 = vector.broadcast %cst_33 : f32 to vector<8x128xf32>
    %120 = arith.addf %118, %119 : vector<8x128xf32>
    %cst_34 = arith.constant 5.000000e-01 : f32
    %121 = vector.broadcast %cst_34 : f32 to vector<8x128xf32>
    %122 = arith.mulf %121, %120 : vector<8x128xf32>
    %123 = arith.select %17, %118, %122 : vector<8x128xi1>, vector<8x128xf32>
    %124 = vector.extract_strided_slice %123 {offsets = [0, 0], sizes = [8, 32], strides = [1, 1]} : vector<8x128xf32> to vector<8x32xf32>
    %125 = vector.extract_strided_slice %123 {offsets = [0, 32], sizes = [8, 32], strides = [1, 1]} : vector<8x128xf32> to vector<8x32xf32>
    %126 = vector.extract_strided_slice %123 {offsets = [0, 64], sizes = [8, 32], strides = [1, 1]} : vector<8x128xf32> to vector<8x32xf32>
    %127 = vector.extract_strided_slice %123 {offsets = [0, 96], sizes = [8, 32], strides = [1, 1]} : vector<8x128xf32> to vector<8x32xf32>
    %128 = arith.mulf %125, %111 : vector<8x32xf32>
    %129 = arith.mulf %124, %126 : vector<8x32xf32>
    %130 = arith.addf %128, %129 : vector<8x32xf32>
    %131 = math.tanh %130 : vector<8x32xf32>
    %132 = arith.mulf %127, %131 : vector<8x32xf32>
    %c40 = arith.constant 40 : index
    %c0_35 = arith.constant 0 : index
    %133 = vector.load %arg8[%c40, %c0_35] : memref<64x32xf32, #tpu.memory_space<vmem>>, vector<8x32xf32>
    tpu.vector_store %arg8[%c40, %c0_35], %132 {strides = array<i32>} : memref<64x32xf32, #tpu.memory_space<vmem>>, vector<8x32xf32>,
    %134 = vector.extract_strided_slice %10 {offsets = [48, 0], sizes = [8, 128], strides = [1, 1]} : vector<64x128xf32> to vector<8x128xf32>
    %cst_36 = arith.constant dense<0.000000e+00> : vector<8x128xf32>
    %135 = tpu.matmul %132, %11, %cst_36 {dimension_numbers = #tpu.dot_dimension_numbers<[1], [0], [0], [1], [0, 0, 1, 1], [], []>} : vector<8x32xf32>, vector<32x128xf32>, vector<8x128xf32> -> vector<8x128xf32>
    %136 = arith.addf %134, %135 : vector<8x128xf32>
    %137 = math.tanh %136 : vector<8x128xf32>
    %cst_37 = arith.constant 1.000000e+00 : f32
    %138 = vector.broadcast %cst_37 : f32 to vector<8x128xf32>
    %139 = arith.addf %137, %138 : vector<8x128xf32>
    %cst_38 = arith.constant 5.000000e-01 : f32
    %140 = vector.broadcast %cst_38 : f32 to vector<8x128xf32>
    %141 = arith.mulf %140, %139 : vector<8x128xf32>
    %142 = arith.select %17, %137, %141 : vector<8x128xi1>, vector<8x128xf32>
    %143 = vector.extract_strided_slice %142 {offsets = [0, 0], sizes = [8, 32], strides = [1, 1]} : vector<8x128xf32> to vector<8x32xf32>
    %144 = vector.extract_strided_slice %142 {offsets = [0, 32], sizes = [8, 32], strides = [1, 1]} : vector<8x128xf32> to vector<8x32xf32>
    %145 = vector.extract_strided_slice %142 {offsets = [0, 64], sizes = [8, 32], strides = [1, 1]} : vector<8x128xf32> to vector<8x32xf32>
    %146 = vector.extract_strided_slice %142 {offsets = [0, 96], sizes = [8, 32], strides = [1, 1]} : vector<8x128xf32> to vector<8x32xf32>
    %147 = arith.mulf %144, %130 : vector<8x32xf32>
    %148 = arith.mulf %143, %145 : vector<8x32xf32>
    %149 = arith.addf %147, %148 : vector<8x32xf32>
    %150 = math.tanh %149 : vector<8x32xf32>
    %151 = arith.mulf %146, %150 : vector<8x32xf32>
    %c48 = arith.constant 48 : index
    %c0_39 = arith.constant 0 : index
    %152 = vector.load %arg8[%c48, %c0_39] : memref<64x32xf32, #tpu.memory_space<vmem>>, vector<8x32xf32>
    tpu.vector_store %arg8[%c48, %c0_39], %151 {strides = array<i32>} : memref<64x32xf32, #tpu.memory_space<vmem>>, vector<8x32xf32>,
    %153 = vector.extract_strided_slice %10 {offsets = [56, 0], sizes = [8, 128], strides = [1, 1]} : vector<64x128xf32> to vector<8x128xf32>
    %cst_40 = arith.constant dense<0.000000e+00> : vector<8x128xf32>
    %154 = tpu.matmul %151, %11, %cst_40 {dimension_numbers = #tpu.dot_dimension_numbers<[1], [0], [0], [1], [0, 0, 1, 1], [], []>} : vector<8x32xf32>, vector<32x128xf32>, vector<8x128xf32> -> vector<8x128xf32>
    %155 = arith.addf %153, %154 : vector<8x128xf32>
    %156 = math.tanh %155 : vector<8x128xf32>
    %cst_41 = arith.constant 1.000000e+00 : f32
    %157 = vector.broadcast %cst_41 : f32 to vector<8x128xf32>
    %158 = arith.addf %156, %157 : vector<8x128xf32>
    %cst_42 = arith.constant 5.000000e-01 : f32
    %159 = vector.broadcast %cst_42 : f32 to vector<8x128xf32>
    %160 = arith.mulf %159, %158 : vector<8x128xf32>
    %161 = arith.select %17, %156, %160 : vector<8x128xi1>, vector<8x128xf32>
    %162 = vector.extract_strided_slice %161 {offsets = [0, 0], sizes = [8, 32], strides = [1, 1]} : vector<8x128xf32> to vector<8x32xf32>
    %163 = vector.extract_strided_slice %161 {offsets = [0, 32], sizes = [8, 32], strides = [1, 1]} : vector<8x128xf32> to vector<8x32xf32>
    %164 = vector.extract_strided_slice %161 {offsets = [0, 64], sizes = [8, 32], strides = [1, 1]} : vector<8x128xf32> to vector<8x32xf32>
    %165 = vector.extract_strided_slice %161 {offsets = [0, 96], sizes = [8, 32], strides = [1, 1]} : vector<8x128xf32> to vector<8x32xf32>
    %166 = arith.mulf %163, %149 : vector<8x32xf32>
    %167 = arith.mulf %162, %164 : vector<8x32xf32>
    %168 = arith.addf %166, %167 : vector<8x32xf32>
    %169 = math.tanh %168 : vector<8x32xf32>
    %170 = arith.mulf %165, %169 : vector<8x32xf32>
    %c56 = arith.constant 56 : index
    %c0_43 = arith.constant 0 : index
    %171 = vector.load %arg8[%c56, %c0_43] : memref<64x32xf32, #tpu.memory_space<vmem>>, vector<8x32xf32>
    tpu.vector_store %arg8[%c56, %c0_43], %170 {strides = array<i32>} : memref<64x32xf32, #tpu.memory_space<vmem>>, vector<8x32xf32>,
    %c0_44 = arith.constant 0 : index
    %c0_45 = arith.constant 0 : index
    %172 = vector.load %arg9[%c0_44, %c0_45] : memref<8x32xf32, #tpu.memory_space<vmem>>, vector<8x32xf32>
    tpu.vector_store %arg9[%c0_44, %c0_45], %170 {strides = array<i32>} : memref<8x32xf32, #tpu.memory_space<vmem>>, vector<8x32xf32>,
    %c0_46 = arith.constant 0 : index
    %c0_47 = arith.constant 0 : index
    %173 = vector.load %arg10[%c0_46, %c0_47] : memref<8x32xf32, #tpu.memory_space<vmem>>, vector<8x32xf32>
    tpu.vector_store %arg10[%c0_46, %c0_47], %168 {strides = array<i32>} : memref<8x32xf32, #tpu.memory_space<vmem>>, vector<8x32xf32>,
    %c0_48 = arith.constant 0 : index
    %c0_49 = arith.constant 0 : index
    %174 = vector.load %arg8[%c0_48, %c0_49] : memref<64x32xf32, #tpu.memory_space<vmem>>, vector<64x32xf32>
    %c0_50 = arith.constant 0 : index
    %c0_51 = arith.constant 0 : index
    %175 = vector.load %arg5[%c0_50, %c0_51] : memref<32x128xf32, #tpu.memory_space<vmem>>, vector<32x128xf32>
    %cst_52 = arith.constant dense<0.000000e+00> : vector<64x128xf32>
    %176 = tpu.matmul %174, %175, %cst_52 {dimension_numbers = #tpu.dot_dimension_numbers<[1], [0], [0], [1], [0, 0, 1, 1], [], []>} : vector<64x32xf32>, vector<32x128xf32>, vector<64x128xf32> -> vector<64x128xf32>
    %c0_53 = arith.constant 0 : index
    %c0_54 = arith.constant 0 : index
    %177 = vector.load %arg6[%c0_53, %c0_54] : memref<1x128xf32, #tpu.memory_space<vmem>>, vector<1x128xf32>
    %178 = vector.broadcast %177 : vector<1x128xf32> to vector<64x128xf32>
    %179 = arith.addf %176, %178 : vector<64x128xf32>
    %c0_55 = arith.constant 0 : index
    %c0_56 = arith.constant 0 : index
    %180 = vector.load %arg7[%c0_55, %c0_56] : memref<64x128xf32, #tpu.memory_space<vmem>>, vector<64x128xf32>
    tpu.vector_store %arg7[%c0_55, %c0_56], %179 {strides = array<i32>} : memref<64x128xf32, #tpu.memory_space<vmem>>, vector<64x128xf32>,
    return
  }
  func.func @transform_0(%arg0: i32) -> (i32, i32) {
    %c0_i32 = arith.constant 0 : i32
    %c0_i32_0 = arith.constant 0 : i32
    return %arg0, %c0_i32 : i32, i32
  }
  func.func @transform_1(%arg0: i32) -> (i32, i32) {
    %c0_i32 = arith.constant 0 : i32
    %c0_i32_0 = arith.constant 0 : i32
    %c0_i32_1 = arith.constant 0 : i32
    return %c0_i32, %c0_i32_0 : i32, i32
  }
  func.func @transform_2(%arg0: i32) -> (i32, i32) {
    %c0_i32 = arith.constant 0 : i32
    %c0_i32_0 = arith.constant 0 : i32
    %c0_i32_1 = arith.constant 0 : i32
    return %c0_i32, %c0_i32_0 : i32, i32
  }
  func.func @transform_3(%arg0: i32) -> (i32, i32) {
    %c0_i32 = arith.constant 0 : i32
    %c0_i32_0 = arith.constant 0 : i32
    %c0_i32_1 = arith.constant 0 : i32
    return %c0_i32, %c0_i32_0 : i32, i32
  }
  func.func @transform_4(%arg0: i32) -> (i32, i32) {
    %c0_i32 = arith.constant 0 : i32
    %c0_i32_0 = arith.constant 0 : i32
    %c0_i32_1 = arith.constant 0 : i32
    return %c0_i32, %c0_i32_0 : i32, i32
  }
  func.func @transform_5(%arg0: i32) -> (i32, i32) {
    %c0_i32 = arith.constant 0 : i32
    %c0_i32_0 = arith.constant 0 : i32
    %c0_i32_1 = arith.constant 0 : i32
    return %c0_i32, %c0_i32_0 : i32, i32
  }
  func.func @transform_6(%arg0: i32) -> (i32, i32) {
    %c0_i32 = arith.constant 0 : i32
    %c0_i32_0 = arith.constant 0 : i32
    return %arg0, %c0_i32 : i32, i32
  }
}

</mosaic_0001>

<bundles_post_ra>
// kernel: tpu_custom_call.1
= control target key start
LH: loop header
LB: loop body
LE: loop exit
PB: predicated region body
PF: predicated region fallthrough
CT: control target
= control target key end

     0   :  { %vm28_vm0 = vcmask 261120   ;;  %v1340_v1 = vmov 0.0   ;;  %vm1341_vm1 = vmmov 0   ;;  %v1342_v4 = vmov 0   ;;  %s1649_s0 = inlined_call_operand.vmem [shape: f32[64,1], index: 0, kind: input, shape index: {}]   ;;  %s1650_s1 = inlined_call_operand.vmem [shape: f32[1,128], index: 1, kind: input, shape index: {}]   ;;  %s1651_s2 = inlined_call_operand.vmem [shape: f32[32,128], index: 2, kind: input, shape index: {}]   ;;  %s1652_s3 = inlined_call_operand.vmem [shape: f32[1,128], index: 3, kind: input, shape index: {}]   ;;  %s1653_s4 = inlined_call_operand.vmem [shape: f32[32,128], index: 4, kind: input, shape index: {}]   ;;  %s1654_s5 = inlined_call_operand.vmem [shape: f32[1,128], index: 5, kind: input, shape index: {}]   ;;  %s1655_s6 = inlined_call_operand.hbm [shape: f32[64,128], index: 6, kind: output, shape index: {}]  }
   0x1   :  { %v1387_v0 = vld [vmem:[%s1651_s2 + $0x18] sm:$0xff]  ;;  %1167 = vmatprep.subr.mxu1 %v1340_v1  ;;  %v1393_v2 = vld [vmem:[%s1651_s2 + $0x10] sm:$0xff]  ;;  %1175 = vmatprep.mubr.msk.f32.mxu1 %vm1341_vm1, %v1340_v1  ;;  %29 = vst.msk [vmem:[#allocation3] sm:$0xff] %vm28_vm0, %v1340_v1  ;;  %30 = vst.msk [vmem:[#allocation4] sm:$0xff] %vm28_vm0, %v1340_v1 }
   0x2   :  { %v31_v3 = vld [vmem:[%s1649_s0] sm:$0xff]  ;;  %1168 = vmatpush3.msra.mxu1 %v1387_v0  ;;  %1284 = vset.pattern.permute.xlu0 %v1342_v4 }
   0x3   :  { %11 = vsyncpa [#allocation6], 0  ;;  %1169 = vmatprep.subr.mxu1 %v1340_v1  ;;  %v1409_v5 = vld [vmem:[%s1651_s2 + $0x8] sm:$0xff]  ;;  %42 = vperm.xlu0 %1284, %v31_v3   ;;  %v1417_v6 = vld [vmem:[%s1651_s2] sm:$0xff]  ;;  %s1343_s2 = smov 32   ;;  %v113_v17 = vlaneseq  ;;  %s1346_s8 = smov [#allocation5]  }
   0x4   :  { %1170 = vmatpush3.msra.mxu1 %v1393_v2  ;;  %1189 = vmatprep.subr.mxu0 %v1340_v1  ;;  %v1448_v9 = vld [vmem:[%s1650_s1] ss:$0 sm:$0xff]  ;;  %s1344_s1 = smov 64   ;;  %v32_v31 = vld [vmem:[%s1649_s0 + $0x8] sm:$0xff]  ;;  %v33_v51 = vld [vmem:[%s1649_s0 + $0x10] sm:$0xff]  ;;  %s1085_s9 = sshll.u32 %s1346_s8, 4  ;;  %s1086_s9 = int_to_ptr.vmem [resolvable:$true] %s1085_s9 }
   0x5   :  { %1171 = vmatprep.subr.mxu1 %v1340_v1  ;;  %1190 = vmatpush3.msra.mxu0 %v1387_v0  ;;  %v1454_v12 = vld [vmem:[%s1652_s3] ss:$0 sm:$0xff]  ;;  %v114_v18 = vand.u32 127, %v113_v17  ;;  %p1323_p1 = scmp.lt.s32.totalorder %s1086_s9, %s1086_s9 }
   0x6   :  { %1172 = vmatpush3.msra.mxu1 %v1409_v5  ;;  %1191 = vmatprep.subr.mxu0 %v1340_v1 }
   0x7   :  { %1173 = vmatprep.subr.mxu1 %v1340_v1  ;;  %1192 = vmatpush3.msra.mxu0 %v1393_v2  ;;  %vm115_vm2 = vcmp.ge.s32.totalorder %v114_v18, 64  ;;  %vm116_vm3 = vcmp.lt.s32.totalorder %v114_v18, 96 }
   0x8   :  { %1174 = vmatpush3.msra.mxu1 %v1417_v6  ;;  %v118_v7 = vld [vmem:[#allocation3] sm:$0xff]  ;;  %v119_v8 = vld [vmem:[#allocation4] sm:$0xff]  ;;  %1193 = vmatprep.subr.mxu0 %v1340_v1  ;;  %vm1457_vm4 = vmand %vm115_vm2, %vm116_vm3 }
   0x9   :  { %1176 = vmatmul.mubr.msk.f32.vlgmr.msra.gmra.mxu1 %vm28_vm0, %v118_v7  ;;  %200 = vrot.lane.b32.xlu1 %v119_v8, %s1343_s2 }
   0xa   :  { %1178 = vmatprep.subr.mxu1 %v1340_v1  ;;  %1186 = vmatprep.mubr.msk.f32.mxu1 %vm1341_vm1, %v1340_v1 }
   0xb   :  { %1179 = vmatpush3.msra.mxu1 %v1387_v0  ;;  %1194 = vmatpush3.msra.mxu0 %v1409_v5 }
   0xc   :  { %1180 = vmatprep.subr.mxu1 %v1340_v1  ;;  %1195 = vmatprep.subr.mxu0 %v1340_v1 }
   0xd   :  { %1181 = vmatpush3.msra.mxu1 %v1393_v2  ;;  %1196 = vmatpush3.msra.mxu0 %v1417_v6 }
   0xe   :  { %1182 = vmatprep.subr.mxu1 %v1340_v1  ;;  %1197 = vmatprep.mubr.msk.f32.mxu0 %vm1341_vm1, %v1340_v1 }
   0xf   :  { %1183 = vmatpush3.msra.mxu1 %v1409_v5  ;;  %1285 = vset.pattern.permute.xlu1 %v1342_v4 }
  0x10   :  { %1184 = vmatprep.subr.mxu1 %v1340_v1  ;;  %1211 = vmatprep.subr.mxu0 %v1340_v1 }
  0x11   :  { %1185 = vmatpush3.msra.mxu1 %v1417_v6 }
  0x12   :  { %1200 = vmatprep.subr.mxu1 %v1340_v1 }
  0x7b   :  { %v201_v26 = vpop.permute.xlu1 %200 }
  0x7e   :  { %v43_v10 = vpop.permute.xlu0 %42 }
  0x7f   :  { %v86_v11 = vmul.f32 %v1448_v9, %v43_v10 }
  0x81   :  { %v101_v13 = vadd.f32 %v1454_v12, %v86_v11 }
  0xc9   :  { %v190_v14 = vpop.f32.mrf.mxu1 }
  0xca   :  { %v194_v15 = vadd.f32 %v190_v14, %v101_v13  ;;  %v34_v14 = vld [vmem:[%s1649_s0 + $0x18] sm:$0xff] }
  0xcb   :  { %v1177_v16 = vpop.f32.mrf.mxu1 }
  0xcc   :  { %1286 = vtanh.f32 %v194_v15 }
  0xd9   :  { %v1287_v19 = vpop.eup %1286 }
  0xda   :  { %v196_v20 = vadd.f32 1.0, %v1287_v19 }
  0xdc   :  { %v197_v22 = vmul.f32 0.5, %v196_v20 }
  0xde   :  { %v198_v23 = vsel %vm1457_vm4, %v1287_v19, %v197_v22 }
  0xdf   :  { %205 = vrot.lane.b32.xlu0 %v198_v23, %s1344_s1  ;;  %v203_v27 = vmul.f32 %v201_v26, %v198_v23 }
 0x151   :  { %v206_v24 = vpop.permute.xlu0 %205 }
 0x152   :  { %v208_v25 = vmul.f32 %v206_v24, %v198_v23 }
 0x154   :  { %210 = vrot.lane.b32.xlu1 %v208_v25, %s1343_s2 }
 0x1c6   :  { %v211_v28 = vpop.permute.xlu1 %210 }
 0x1c7   :  { %v213_v29 = vadd.f32 %v211_v28, %v203_v27 }
 0x1c9   :  { %1288 = vtanh.f32 %v213_v29 }
 0x1d6   :  { %v1289_v30 = vpop.eup %1288 }
 0x1d7   :  { %216 = vrot.lane.b32.xlu0 %v1289_v30, %s1344_s1 }
 0x1db   :  { %47 = vperm.xlu0 %1284, %v32_v31  }
 0x249   :  { %v217_v32 = vpop.permute.xlu0 %216 }
 0x24a   :  { %v219_v33 = vmul.f32 %v217_v32, %v198_v23 }
 0x24c   :  { %221 = vrot.lane.b32.xlu1 %v219_v33, %s1343_s2 }
 0x256   :  { %v48_v35 = vpop.permute.xlu0 %47 }
 0x257   :  { %v87_v36 = vmul.f32 %v1448_v9, %v48_v35  ;;  %v35_v35 = vld [vmem:[%s1649_s0 + $0x20] sm:$0xff] }
 0x259   :  { %v102_v37 = vadd.f32 %v1454_v12, %v87_v36 }
 0x2be   :  { %v222_v34 = vpop.permute.xlu1 %221 }
 0x2bf   :  { %224 = vst.msk [vmem:[#allocation2] sm:$0xff] %vm28_vm0, %v222_v34  ;;  %1187 = vmatmul.mubr.msk.f32.vlgmr.msra.gmra.mxu1 %vm28_vm0, %v222_v34 }
 0x2c0   :  { %1201 = vmatpush3.msra.mxu1 %v1387_v0  ;;  %1208 = vmatprep.mubr.msk.f32.mxu1 %vm1341_vm1, %v1340_v1 }
 0x2c1   :  { %1202 = vmatprep.subr.mxu1 %v1340_v1 }
 0x2c2   :  { %1203 = vmatpush3.msra.mxu1 %v1393_v2 }
 0x2c3   :  { %1204 = vmatprep.subr.mxu1 %v1340_v1 }
 0x2c4   :  { %1205 = vmatpush3.msra.mxu1 %v1409_v5 }
 0x2c5   :  { %1206 = vmatprep.subr.mxu1 %v1340_v1 }
 0x2c6   :  { %1207 = vmatpush3.msra.mxu1 %v1417_v6 }
 0x2c7   :  { %1222 = vmatprep.subr.mxu1 %v1340_v1 }
 0x37f   :  { %v293_v38 = vpop.f32.mrf.mxu1 }
 0x380   :  { %v297_v39 = vadd.f32 %v293_v38, %v102_v37 }
 0x381   :  { %v1188_v40 = vpop.f32.mrf.mxu1 }
 0x382   :  { %1290 = vtanh.f32 %v297_v39 }
 0x38f   :  { %v1291_v41 = vpop.eup %1290 }
 0x390   :  { %v299_v42 = vadd.f32 1.0, %v1291_v41 }
 0x392   :  { %v300_v43 = vmul.f32 0.5, %v299_v42 }
 0x394   :  { %v301_v44 = vsel %vm1457_vm4, %v1291_v41, %v300_v43 }
 0x395   :  { %304 = vrot.lane.b32.xlu1 %v301_v44, %s1344_s1  ;;  %v302_v47 = vmul.f32 %v301_v44, %v213_v29 }
 0x407   :  { %v305_v45 = vpop.permute.xlu1 %304 }
 0x408   :  { %v307_v46 = vmul.f32 %v305_v45, %v301_v44 }
 0x40a   :  { %309 = vrot.lane.b32.xlu0 %v307_v46, %s1343_s2 }
 0x47c   :  { %v310_v48 = vpop.permute.xlu0 %309 }
 0x47d   :  { %v312_v49 = vadd.f32 %v310_v48, %v302_v47 }
 0x47f   :  { %1292 = vtanh.f32 %v312_v49 }
 0x48c   :  { %v1293_v50 = vpop.eup %1292 }
 0x48d   :  { %315 = vrot.lane.b32.xlu1 %v1293_v50, %s1344_s1 }
 0x491   :  { %52 = vperm.xlu1 %1285, %v33_v51  }
 0x4ff   :  { %v316_v52 = vpop.permute.xlu1 %315 }
 0x500   :  { %v318_v53 = vmul.f32 %v316_v52, %v301_v44 }
 0x502   :  { %320 = vrot.lane.b32.xlu0 %v318_v53, %s1343_s2 }
 0x50c   :  { %v53_v55 = vpop.permute.xlu1 %52 }
 0x50d   :  { %v88_v56 = vmul.f32 %v1448_v9, %v53_v55  ;;  %v36_v55 = vld [vmem:[%s1649_s0 + $0x28] sm:$0xff] }
 0x50f   :  { %v103_v57 = vadd.f32 %v1454_v12, %v88_v56 }
 0x574   :  { %v321_v54 = vpop.permute.xlu0 %320 }
 0x575   :  { %323 = vst.msk [vmem:[#allocation2 + $0x8] sm:$0xff] %vm28_vm0, %v321_v54  ;;  %1198 = vmatmul.mubr.msk.f32.vlgmr.msra.gmra.mxu0 %vm28_vm0, %v321_v54 }
 0x576   :  { %1212 = vmatpush3.msra.mxu0 %v1387_v0  ;;  %1219 = vmatprep.mubr.msk.f32.mxu0 %vm1341_vm1, %v1340_v1 }
 0x577   :  { %1213 = vmatprep.subr.mxu0 %v1340_v1 }
 0x578   :  { %1214 = vmatpush3.msra.mxu0 %v1393_v2 }
 0x579   :  { %1215 = vmatprep.subr.mxu0 %v1340_v1 }
 0x57a   :  { %1216 = vmatpush3.msra.mxu0 %v1409_v5 }
 0x57b   :  { %1217 = vmatprep.subr.mxu0 %v1340_v1 }
 0x57c   :  { %1218 = vmatpush3.msra.mxu0 %v1417_v6 }
 0x57d   :  { %1233 = vmatprep.subr.mxu0 %v1340_v1 }
 0x635   :  { %v392_v58 = vpop.f32.mrf.mxu0 }
 0x636   :  { %v396_v59 = vadd.f32 %v392_v58, %v103_v57 }
 0x637   :  { %v1199_v60 = vpop.f32.mrf.mxu0 }
 0x638   :  { %1294 = vtanh.f32 %v396_v59 }
 0x645   :  { %v1295_v61 = vpop.eup %1294 }
 0x646   :  { %v398_v62 = vadd.f32 1.0, %v1295_v61 }
 0x648   :  { %v399_v63 = vmul.f32 0.5, %v398_v62 }
 0x64a   :  { %v400_v3 = vsel %vm1457_vm4, %v1295_v61, %v399_v63 }
 0x64b   :  { %403 = vrot.lane.b32.xlu0 %v400_v3, %s1344_s1  ;;  %v401_v8 = vmul.f32 %v400_v3, %v312_v49 }
 0x6bd   :  { %v404_v4 = vpop.permute.xlu0 %403 }
 0x6be   :  { %v406_v7 = vmul.f32 %v404_v4, %v400_v3 }
 0x6c0   :  { %408 = vrot.lane.b32.xlu1 %v406_v7, %s1343_s2 }
 0x732   :  { %v409_v10 = vpop.permute.xlu1 %408 }
 0x733   :  { %v411_v11 = vadd.f32 %v409_v10, %v401_v8 }
 0x735   :  { %1296 = vtanh.f32 %v411_v11 }
 0x742   :  { %v1297_v13 = vpop.eup %1296 }
 0x743   :  { %414 = vrot.lane.b32.xlu0 %v1297_v13, %s1344_s1  ;;  %v935_v13 = vld [vmem:[%s1653_s4 + $0x18] sm:$0xff] }
 0x747   :  { %57 = vperm.xlu0 %1284, %v34_v14   ;;  %v37_v14 = vld [vmem:[%s1649_s0 + $0x30] sm:$0xff] }
 0x7b5   :  { %v415_v15 = vpop.permute.xlu0 %414 }
 0x7b6   :  { %v417_v16 = vmul.f32 %v415_v15, %v400_v3 }
 0x7b8   :  { %419 = vrot.lane.b32.xlu1 %v417_v16, %s1343_s2 }
 0x7c2   :  { %v58_v18 = vpop.permute.xlu0 %57 }
 0x7c3   :  { %v89_v19 = vmul.f32 %v1448_v9, %v58_v18  ;;  %v934_v18 = vld [vmem:[%s1653_s4 + $0x10] sm:$0xff] }
 0x7c5   :  { %v104_v20 = vadd.f32 %v1454_v12, %v89_v19  ;;  %v924_v19 = vld [vmem:[#allocation2] sm:$0xff] }
 0x82a   :  { %v420_v17 = vpop.permute.xlu1 %419 }
 0x82b   :  { %422 = vst.msk [vmem:[#allocation2 + $0x10] sm:$0xff] %vm28_vm0, %v420_v17  ;;  %1209 = vmatmul.mubr.msk.f32.vlgmr.msra.gmra.mxu1 %vm28_vm0, %v420_v17 }
 0x82c   :  { %1223 = vmatpush3.msra.mxu1 %v1387_v0  ;;  %1230 = vmatprep.mubr.msk.f32.mxu1 %vm1341_vm1, %v1340_v1 }
 0x82d   :  { %1224 = vmatprep.subr.mxu1 %v1340_v1 }
 0x82e   :  { %1225 = vmatpush3.msra.mxu1 %v1393_v2 }
 0x82f   :  { %1226 = vmatprep.subr.mxu1 %v1340_v1 }
 0x830   :  { %1227 = vmatpush3.msra.mxu1 %v1409_v5 }
 0x831   :  { %1228 = vmatprep.subr.mxu1 %v1340_v1 }
 0x832   :  { %1229 = vmatpush3.msra.mxu1 %v1417_v6 }
 0x833   :  { %1244 = vmatprep.subr.mxu1 %v1340_v1 }
 0x8eb   :  { %v491_v22 = vpop.f32.mrf.mxu1 }
 0x8ec   :  { %v495_v23 = vadd.f32 %v491_v22, %v104_v20  ;;  %v933_v20 = vld [vmem:[%s1653_s4 + $0x8] sm:$0xff]  ;;  %v932_v22 = vld [vmem:[%s1653_s4] sm:$0xff] }
 0x8ed   :  { %v1210_v24 = vpop.f32.mrf.mxu1 }
 0x8ee   :  { %1298 = vtanh.f32 %v495_v23  ;;  %v925_v23 = vld [vmem:[#allocation2 + $0x8] sm:$0xff]  ;;  %v926_v24 = vld [vmem:[#allocation2 + $0x10] sm:$0xff] }
 0x8fb   :  { %v1299_v25 = vpop.eup %1298 }
 0x8fc   :  { %v497_v26 = vadd.f32 1.0, %v1299_v25 }
 0x8fe   :  { %v498_v27 = vmul.f32 0.5, %v497_v26 }
 0x900   :  { %v499_v28 = vsel %vm1457_vm4, %v1299_v25, %v498_v27 }
 0x901   :  { %502 = vrot.lane.b32.xlu1 %v499_v28, %s1344_s1  ;;  %v500_v31 = vmul.f32 %v499_v28, %v411_v11 }
 0x973   :  { %v503_v29 = vpop.permute.xlu1 %502 }
 0x974   :  { %v505_v30 = vmul.f32 %v503_v29, %v499_v28 }
 0x976   :  { %507 = vrot.lane.b32.xlu0 %v505_v30, %s1343_s2 }
 0x9e8   :  { %v508_v32 = vpop.permute.xlu0 %507 }
 0x9e9   :  { %v510_v33 = vadd.f32 %v508_v32, %v500_v31 }
 0x9eb   :  { %1300 = vtanh.f32 %v510_v33 }
 0x9f8   :  { %v1301_v34 = vpop.eup %1300 }
 0x9f9   :  { %513 = vrot.lane.b32.xlu1 %v1301_v34, %s1344_s1  ;;  %v1611_v34 = vld [vmem:[%s1654_s5] ss:$0 sm:$0xff] }
 0x9fd   :  { %62 = vperm.xlu1 %1285, %v35_v35  }
 0xa6b   :  { %v514_v36 = vpop.permute.xlu1 %513 }
 0xa6c   :  { %v516_v37 = vmul.f32 %v514_v36, %v499_v28 }
 0xa6e   :  { %518 = vrot.lane.b32.xlu0 %v516_v37, %s1343_s2 }
 0xa78   :  { %v63_v39 = vpop.permute.xlu1 %62 }
 0xa79   :  { %v90_v40 = vmul.f32 %v1448_v9, %v63_v39 }
 0xa7b   :  { %v105_v41 = vadd.f32 %v1454_v12, %v90_v40 }
 0xae0   :  { %v519_v38 = vpop.permute.xlu0 %518 }
 0xae1   :  { %521 = vst.msk [vmem:[#allocation2 + $0x18] sm:$0xff] %vm28_vm0, %v519_v38  ;;  %1220 = vmatmul.mubr.msk.f32.vlgmr.msra.gmra.mxu0 %vm28_vm0, %v519_v38 }
 0xae2   :  { %1234 = vmatpush3.msra.mxu0 %v1387_v0  ;;  %1241 = vmatprep.mubr.msk.f32.mxu0 %vm1341_vm1, %v1340_v1 }
 0xae3   :  { %1235 = vmatprep.subr.mxu0 %v1340_v1 }
 0xae4   :  { %1236 = vmatpush3.msra.mxu0 %v1393_v2 }
 0xae5   :  { %1237 = vmatprep.subr.mxu0 %v1340_v1 }
 0xae6   :  { %1238 = vmatpush3.msra.mxu0 %v1409_v5 }
 0xae7   :  { %1239 = vmatprep.subr.mxu0 %v1340_v1 }
 0xae8   :  { %1240 = vmatpush3.msra.mxu0 %v1417_v6  ;;  %v927_v25 = vld [vmem:[#allocation2 + $0x18] sm:$0xff] }
 0xae9   :  { %1255 = vmatprep.subr.mxu0 %v935_v13 }
 0xba1   :  { %v590_v42 = vpop.f32.mrf.mxu0 }
 0xba2   :  { %v594_v43 = vadd.f32 %v590_v42, %v105_v41 }
 0xba3   :  { %v1221_v44 = vpop.f32.mrf.mxu0 }
 0xba4   :  { %1302 = vtanh.f32 %v594_v43 }
 0xbb1   :  { %v1303_v45 = vpop.eup %1302 }
 0xbb2   :  { %v596_v46 = vadd.f32 1.0, %v1303_v45 }
 0xbb4   :  { %v597_v47 = vmul.f32 0.5, %v596_v46 }
 0xbb6   :  { %v598_v48 = vsel %vm1457_vm4, %v1303_v45, %v597_v47 }
 0xbb7   :  { %601 = vrot.lane.b32.xlu0 %v598_v48, %s1344_s1  ;;  %v599_v51 = vmul.f32 %v598_v48, %v510_v33 }
 0xc29   :  { %v602_v49 = vpop.permute.xlu0 %601 }
 0xc2a   :  { %v604_v50 = vmul.f32 %v602_v49, %v598_v48 }
 0xc2c   :  { %606 = vrot.lane.b32.xlu1 %v604_v50, %s1343_s2 }
 0xc9e   :  { %v607_v52 = vpop.permute.xlu1 %606 }
 0xc9f   :  { %v609_v53 = vadd.f32 %v607_v52, %v599_v51 }
 0xca1   :  { %1304 = vtanh.f32 %v609_v53 }
 0xcae   :  { %v1305_v54 = vpop.eup %1304 }
 0xcaf   :  { %612 = vrot.lane.b32.xlu0 %v1305_v54, %s1344_s1 }
 0xcb3   :  { %67 = vperm.xlu0 %1284, %v36_v55  }
 0xd21   :  { %v613_v56 = vpop.permute.xlu0 %612 }
 0xd22   :  { %v615_v57 = vmul.f32 %v613_v56, %v598_v48 }
 0xd24   :  { %617 = vrot.lane.b32.xlu1 %v615_v57, %s1343_s2  ;;  %v38_v57 = vld [vmem:[%s1649_s0 + $0x38] sm:$0xff]  ;;  %s1345_s0 = smov 96  }
 0xd2e   :  { %v68_v59 = vpop.permute.xlu0 %67 }
 0xd2f   :  { %v91_v60 = vmul.f32 %v1448_v9, %v68_v59 }
 0xd96   :  { %v618_v58 = vpop.permute.xlu1 %617 }
 0xd97   :  { %620 = vst.msk [vmem:[#allocation2 + $0x20] sm:$0xff] %vm28_vm0, %v618_v58  ;;  %1231 = vmatmul.mubr.msk.f32.vlgmr.msra.gmra.mxu1 %vm28_vm0, %v618_v58 }
 0xd98   :  { %1245 = vmatpush3.msra.mxu1 %v1387_v0  ;;  %1252 = vmatprep.mubr.msk.f32.mxu1 %vm1341_vm1, %v1340_v1  ;;  %v106_v0 = vadd.f32 %v1454_v12, %v91_v60 }
 0xd99   :  { %1246 = vmatprep.subr.mxu1 %v1340_v1 }
 0xd9a   :  { %1247 = vmatpush3.msra.mxu1 %v1393_v2 }
 0xd9b   :  { %1248 = vmatprep.subr.mxu1 %v1340_v1 }
 0xd9c   :  { %1249 = vmatpush3.msra.mxu1 %v1409_v5 }
 0xd9d   :  { %1250 = vmatprep.subr.mxu1 %v1340_v1 }
 0xd9e   :  { %1251 = vmatpush3.msra.mxu1 %v1417_v6  ;;  %v928_v26 = vld [vmem:[#allocation2 + $0x20] sm:$0xff] }
 0xe57   :  { %v689_v61 = vpop.f32.mrf.mxu1 }
 0xe58   :  { %v693_v62 = vadd.f32 %v689_v61, %v106_v0 }
 0xe59   :  { %v1232_v63 = vpop.f32.mrf.mxu1 }
 0xe5a   :  { %1306 = vtanh.f32 %v693_v62 }
 0xe67   :  { %v1307_v3 = vpop.eup %1306 }
 0xe68   :  { %v695_v4 = vadd.f32 1.0, %v1307_v3 }
 0xe6a   :  { %v696_v2 = vmul.f32 0.5, %v695_v4 }
 0xe6c   :  { %v697_v7 = vsel %vm1457_vm4, %v1307_v3, %v696_v2 }
 0xe6d   :  { %700 = vrot.lane.b32.xlu1 %v697_v7, %s1344_s1  ;;  %v698_v6 = vmul.f32 %v697_v7, %v609_v53 }
 0xedf   :  { %v701_v1 = vpop.permute.xlu1 %700 }
 0xee0   :  { %v703_v5 = vmul.f32 %v701_v1, %v697_v7 }
 0xee2   :  { %705 = vrot.lane.b32.xlu0 %v703_v5, %s1343_s2 }
 0xf54   :  { %v706_v8 = vpop.permute.xlu0 %705 }
 0xf55   :  { %v1578_v10 = vadd.f32 %v706_v8, %v698_v6 }
 0xf57   :  { %1308 = vtanh.f32 %v1578_v10 }
 0xf64   :  { %v1309_v11 = vpop.eup %1308 }
 0xf65   :  { %711 = vrot.lane.b32.xlu1 %v1309_v11, %s1344_s1 }
 0xf69   :  { %72 = vperm.xlu1 %1285, %v37_v14  }
 0xfd7   :  { %v712_v15 = vpop.permute.xlu1 %711 }
 0xfd8   :  { %v714_v16 = vmul.f32 %v712_v15, %v697_v7 }
 0xfda   :  { %716 = vrot.lane.b32.xlu0 %v714_v16, %s1343_s2 }
 0xfe4   :  { %v73_v28 = vpop.permute.xlu1 %72 }
 0xfe5   :  { %v92_v29 = vmul.f32 %v1448_v9, %v73_v28 }
 0xfe7   :  { %v107_v30 = vadd.f32 %v1454_v12, %v92_v29 }
0x104c   :  { %v717_v17 = vpop.permute.xlu0 %716 }
0x104d   :  { %719 = vst.msk [vmem:[#allocation2 + $0x28] sm:$0xff] %vm28_vm0, %v717_v17  ;;  %1242 = vmatmul.mubr.msk.f32.vlgmr.msra.gmra.mxu0 %vm28_vm0, %v717_v17 }
0x104e   :  { %1256 = vmatpush3.msra.mxu0 %v935_v13  ;;  %1263 = vmatprep.mubr.msk.f32.mxu0 %vm28_vm0, %v924_v19 }
0x104f   :  { %1257 = vmatprep.subr.mxu0 %v934_v18 }
0x1050   :  { %1258 = vmatpush3.msra.mxu0 %v934_v18 }
0x1051   :  { %1259 = vmatprep.subr.mxu0 %v933_v20 }
0x1052   :  { %1260 = vmatpush3.msra.mxu0 %v933_v20 }
0x1053   :  { %1261 = vmatprep.subr.mxu0 %v932_v22 }
0x1054   :  { %1262 = vmatpush3.msra.mxu0 %v932_v22  ;;  %v929_v27 = vld [vmem:[#allocation2 + $0x28] sm:$0xff] }
0x1055   :  { %1264 = vmatmul.mubr.msk.f32.vlgmr.msra.gmra.mxu0 %vm28_vm0, %v925_v23 }
0x1056   :  { %1266 = vmatprep.mubr.msk.f32.mxu0 %vm28_vm0, %v926_v24 }
0x1059   :  { %1267 = vmatmul.mubr.msk.f32.gmra.mxu0 %vm28_vm0, %v927_v25 }
0x105a   :  { %1269 = vmatprep.mubr.msk.f32.mxu0 %vm28_vm0, %v928_v26 }
0x105d   :  { %1270 = vmatmul.mubr.msk.f32.gmra.mxu0 %vm28_vm0, %v929_v27 }
0x110d   :  { %v788_v31 = vpop.f32.mrf.mxu0 }
0x110e   :  { %v792_v32 = vadd.f32 %v788_v31, %v107_v30 }
0x110f   :  { %v1243_v33 = vpop.f32.mrf.mxu0 }
0x1110   :  { %1310 = vtanh.f32 %v792_v32 }
0x1115   :  { %v1265_v35 = vpop.f32.mrf.mxu0 }
0x1116   :  { %v1039_v36 = vadd.f32 %v1265_v35, %v1611_v34 }
0x1117   :  { %v1033_v37 = vpop.f32.mrf.mxu0 }
0x1118   :  { %1073 = vst [vmem:[#allocation5 + $0x8] sm:$0xff] %v1039_v36  ;;  %v1034_v38 = vadd.f32 %v1611_v34, %v1033_v37 }
0x1119   :  { %v1268_v39 = vpop.f32.mrf.mxu0 }
0x111a   :  { %1072 = vst [vmem:[#allocation5] sm:$0xff] %v1034_v38  ;;  %v1049_v40 = vadd.f32 %v1268_v39, %v1611_v34 }
0x111b   :  { %v1043_v41 = vpop.f32.mrf.mxu0 }
0x111c   :  { %1075 = vst [vmem:[#allocation5 + $0x18] sm:$0xff] %v1049_v40  ;;  %v1044_v42 = vadd.f32 %v1611_v34, %v1043_v41 }
0x111d   :  { %v1311_v43 = vpop.eup %1310  ;;  %v1271_v44 = vpop.f32.mrf.mxu0 }
0x111e   :  { %1074 = vst [vmem:[#allocation5 + $0x10] sm:$0xff] %v1044_v42  ;;  %v1059_v45 = vadd.f32 %v1271_v44, %v1611_v34  ;;  %v794_v46 = vadd.f32 1.0, %v1311_v43 }
0x111f   :  { %v1053_v47 = vpop.f32.mrf.mxu0 }
0x1120   :  { %1077 = vst [vmem:[#allocation5 + $0x28] sm:$0xff] %v1059_v45  ;;  %v1054_v48 = vadd.f32 %v1611_v34, %v1053_v47  ;;  %v795_v49 = vmul.f32 0.5, %v794_v46 }
0x1122   :  { %1076 = vst [vmem:[#allocation5 + $0x20] sm:$0xff] %v1054_v48  ;;  %v796_v50 = vsel %vm1457_vm4, %v1311_v43, %v795_v49 }
0x1123   :  { %799 = vrot.lane.b32.xlu0 %v796_v50, %s1344_s1  ;;  %v797_v53 = vmul.f32 %v796_v50, %v1578_v10 }
0x1195   :  { %v800_v51 = vpop.permute.xlu0 %799 }
0x1196   :  { %v802_v52 = vmul.f32 %v800_v51, %v796_v50 }
0x1198   :  { %804 = vrot.lane.b32.xlu1 %v802_v52, %s1343_s2 }
0x120a   :  { %v805_v54 = vpop.permute.xlu1 %804 }
0x120b   :  { %v807_v55 = vadd.f32 %v805_v54, %v797_v53 }
0x120d   :  { %1312 = vtanh.f32 %v807_v55 }
0x121a   :  { %v1313_v56 = vpop.eup %1312 }
0x121b   :  { %810 = vrot.lane.b32.xlu0 %v1313_v56, %s1344_s1 }
0x121f   :  { %77 = vperm.xlu0 %1284, %v38_v57  }
0x128d   :  { %v811_v58 = vpop.permute.xlu0 %810 }
0x128e   :  { %v813_v59 = vmul.f32 %v811_v58, %v796_v50 }
0x1290   :  { %815 = vrot.lane.b32.xlu1 %v813_v59, %s1343_s2 }
0x129a   :  { %v78_v61 = vpop.permute.xlu0 %77 }
0x129b   :  { %v93_v62 = vmul.f32 %v1448_v9, %v78_v61 }
0x129d   :  { %v108_v63 = vadd.f32 %v1454_v12, %v93_v62 }
0x1302   :  { %v816_v60 = vpop.permute.xlu1 %815 }
0x1303   :  { %818 = vst.msk [vmem:[#allocation2 + $0x30] sm:$0xff] %vm28_vm0, %v816_v60  ;;  %1253 = vmatmul.mubr.msk.f32.vlgmr.msra.gmra.mxu1 %vm28_vm0, %v816_v60 }
0x130a   :  { %v930_v0 = vld [vmem:[#allocation2 + $0x30] sm:$0xff] }
0x130b   :  { %1272 = vmatprep.mubr.msk.f32.mxu0 %vm28_vm0, %v930_v0 }
0x13c3   :  { %v887_v3 = vpop.f32.mrf.mxu1 }
0x13c4   :  { %v891_v4 = vadd.f32 %v887_v3, %v108_v63 }
0x13c5   :  { %v1254_v2 = vpop.f32.mrf.mxu1 }
0x13c6   :  { %1314 = vtanh.f32 %v891_v4 }
0x13d3   :  { %v1315_v7 = vpop.eup %1314 }
0x13d4   :  { %v893_v1 = vadd.f32 1.0, %v1315_v7 }
0x13d6   :  { %v894_v5 = vmul.f32 0.5, %v893_v1 }
0x13d8   :  { %v895_v6 = vsel %vm1457_vm4, %v1315_v7, %v894_v5 }
0x13d9   :  { %898 = vrot.lane.b32.xlu1 %v895_v6, %s1344_s1  ;;  %v896_v11 = vmul.f32 %v895_v6, %v807_v55 }
0x144b   :  { %v899_v8 = vpop.permute.xlu1 %898 }
0x144c   :  { %v901_v10 = vmul.f32 %v899_v8, %v895_v6 }
0x144e   :  { %903 = vrot.lane.b32.xlu0 %v901_v10, %s1343_s2 }
0x14c0   :  { %v904_v9 = vpop.permute.xlu0 %903 }
0x14c1   :  { %v906_v13 = vadd.f32 %v904_v9, %v896_v11 }
0x14c3   :  { %1316 = vtanh.f32 %v906_v13 }
0x14d0   :  { %v1317_v12 = vpop.eup %1316 }
0x14d1   :  { %909 = vrot.lane.b32.xlu1 %v1317_v12, %s1344_s1 }
0x14d5   :  { %920 = vrot.lane.b32.xlu1 %v906_v13, %s1345_s0 }
0x1543   :  { %v910_v14 = vpop.permute.xlu1 %909 }
0x1544   :  { %v912_v15 = vmul.f32 %v910_v14, %v895_v6 }
0x1546   :  { %914 = vrot.lane.b32.xlu0 %v912_v15, %s1343_s2  ;;  %s1318_s2 = scalar_lea.vmem %s1086_s9, 1024 }
0x1547   :  { %v921_v21 = vpop.permute.xlu1 %920  ;;  %p1319_p0 = scmp.ne.s32.totalorder %s1086_s9, %s1318_s2  ;;  %p1324_p2 = scmp.lt.s32.totalorder %s1318_s2, %s1318_s2 }
0x1548   :  { %923 = vst.msk [vmem:[#allocation4] sm:$0xff] %vm28_vm0, %v921_v21 }
0x1549   :  { %p1325_p3 = por %p1324_p2, %p1323_p1 }
0x154b   :  { %p1326_p4 = pnand %p1325_p3, %p1319_p0 }
0x15b8   :  { %v915_v16 = vpop.permute.xlu0 %914 }
0x15b9   :  { %917 = vst.msk [vmem:[#allocation2 + $0x38] sm:$0xff] %vm28_vm0, %v915_v16  ;;  %918 = vst.msk [vmem:[#allocation3] sm:$0xff] %vm28_vm0, %v915_v16 }
0x15c0   :  { %v931_v17 = vld [vmem:[#allocation2 + $0x38] sm:$0xff] }
0x15c1   :  { %1273 = vmatmul.mubr.msk.f32.gmra.mxu0 %vm28_vm0, %v931_v17 }
0x1681   :  { %v1274_v18 = vpop.f32.mrf.mxu0 }
0x1682   :  { %v1069_v19 = vadd.f32 %v1274_v18, %v1611_v34 }
0x1683   :  { %v1063_v20 = vpop.f32.mrf.mxu0 }
0x1684   :  { %1079 = vst [vmem:[#allocation5 + $0x38] sm:$0xff] %v1069_v19  ;;  %v1064_v22 = vadd.f32 %v1611_v34, %v1063_v20 }
0x1686   :  { %1078 = vst [vmem:[#allocation5 + $0x30] sm:$0xff] %v1064_v22 }
0x1687   :  { %1329 = shalt.err (!%p1326_p4)
}
0x1688   :  { %s1347_s10 = smov 128   ;;  %s1348_s1 = smov 8  }
0x1689   :  { %1091 = dma.vmem_to_hbm [thread:$0]  %s1086_s9, 1024, %s1655_s6, [#allocation6], %s1347_s10, %s1347_s10, %s1348_s1  }
0x168a   :  { %1338 = dma.done.wait [#allocation6], 1024  }
0x168b   :  { %1339 = vsyncadd [#allocation6], 4294966272 }
0x168c   :  { %1095 = vsyncpa [#allocation6], 1 }

</bundles_post_ra>
